<compile_context>
chip_gen: v7x
topology: tpu7x:2x2x1
jax: 0.10.0
libtpu: 0.0.40
codegen_flags: <defaults>
</compile_context>

<pallas_src>
import jax
import jax.numpy as jnp
from jax.experimental import pallas as pl
from jax.experimental.pallas import tpu as pltpu


def _squared_error_kernel(pred_ref, tgt_ref, out_ref):
    # Whole tile resident in VMEM; elementwise on the VPU.
    diff = pred_ref[...] - tgt_ref[...]
    out_ref[...] = diff * diff


def _round_up(x: int, m: int) -> int:
    return ((x + m - 1) // m) * m


def my_loss_function(model_output: jax.Array, target_output: jax.Array) -> jax.Array:
    """Unreduced squared error (model_output - target_output) ** 2, any shape."""
    assert model_output.shape == target_output.shape
    assert model_output.dtype == target_output.dtype

    orig_shape = model_output.shape
    dtype = model_output.dtype
    itemsize = jnp.dtype(dtype).itemsize
    n_elems = model_output.size

    # ---- layout plumbing: flatten to a lane-dense (rows, W) slab ------------
    # Pick the widest W in {1024..128} that divides the element count; if the
    # total is ragged (not a multiple of 128), pad the flat arrays once.
    lane_width = None
    for cand in (1024, 512, 256, 128):
        if n_elems % cand == 0:
            lane_width = cand
            break
    a = model_output.reshape(-1)
    b = target_output.reshape(-1)
    if lane_width is None:
        lane_width = 1024
        padded = _round_up(n_elems, lane_width)
        a = jnp.pad(a, (0, padded - n_elems))
        b = jnp.pad(b, (0, padded - n_elems))
    n_rows = a.size // lane_width
    a2 = a.reshape(n_rows, lane_width)
    b2 = b.reshape(n_rows, lane_width)

    # ---- byte-budgeted row tiling -------------------------------------------
    sublane = max(8, 32 // itemsize)           # 8 (f32) / 16 (bf16) / 32 (int8/fp8)
    target_block_bytes = 4 * 1024 * 1024       # ~4 MiB per buffer: past roofline knee,
                                               # 3 arrays x 2 bufs ~= 24 MiB VMEM total
    tile_rows = max(
        sublane,
        (target_block_bytes // (lane_width * itemsize)) // sublane * sublane,
    )
    # Never request more rows than the (sublane-rounded) array has; Pallas masks
    # the partial final block, so tile_rows does not need to divide n_rows.
    tile_rows = min(tile_rows, _round_up(n_rows, sublane))
    grid = (pl.cdiv(n_rows, tile_rows),)

    block_bytes = tile_rows * lane_width * itemsize
    # 3 arrays x 2 double-buffers + headroom; capped well under v7x's 64 MiB physical.
    vmem_limit = int(min(96 * 1024 * 1024, max(32 * 1024 * 1024, 8 * block_bytes)))

    # NOTE: for truly tiny inputs a plain (a-b)**2 in XLA would beat the kernel
    # launch; we always dispatch to Pallas here so the kernel path is exercised.
    out2 = pl.pallas_call(
        _squared_error_kernel,
        out_shape=jax.ShapeDtypeStruct((n_rows, lane_width), dtype),
        grid_spec=pltpu.PrefetchScalarGridSpec(
            num_scalar_prefetch=0,
            grid=grid,
            in_specs=[
                pl.BlockSpec((tile_rows, lane_width), lambda i: (i, 0)),
                pl.BlockSpec((tile_rows, lane_width), lambda i: (i, 0)),
            ],
            out_specs=pl.BlockSpec((tile_rows, lane_width), lambda i: (i, 0)),
        ),
        compiler_params=pltpu.CompilerParams(
            dimension_semantics=("parallel",),   # shards the grid across v7x's 2 TCs
            vmem_limit_bytes=vmem_limit,
        ),
        cost_estimate=pl.CostEstimate(
            flops=2 * n_elems,
            transcendentals=0,
            bytes_accessed=3 * n_elems * itemsize,
        ),
    )(a2, b2)

    out = out2.reshape(-1)
    if out.size != n_elems:
        out = out[:n_elems]
    return out.reshape(orig_shape)


if __name__ == "__main__":
    key = jax.random.PRNGKey(0)
    k1, k2, k3, k4 = jax.random.split(key, 4)

    # Primary small test, consistent with the module: batch=8, features=128.
    B, F = 8, 128
    model_output = jax.random.normal(k1, (B, F), dtype=jnp.float32)
    target_output = jax.random.normal(k2, (B, F), dtype=jnp.float32)

    loss = my_loss_function(model_output, target_output)
    jax.block_until_ready(loss)

    ref = (model_output - target_output) ** 2
    assert loss.shape == ref.shape
    assert jnp.allclose(loss, ref, atol=1e-6, rtol=1e-6)

    # Ragged shape exercises the flatten + pad + masked-partial-block path.
    x = jax.random.normal(k3, (5, 37), dtype=jnp.float32)
    y = jax.random.normal(k4, (5, 37), dtype=jnp.float32)
    out = my_loss_function(x, y)
    jax.block_until_ready(out)
    assert out.shape == x.shape
    assert jnp.allclose(out, (x - y) ** 2, atol=1e-6, rtol=1e-6)

    print("KERNEL_OK")
</pallas_src>

<mosaic_0001>
module attributes {stable_mosaic.version = 11 : i64} {
  func.func @_squared_error_kernel(%arg0: i32, %arg1: memref<8x1024xf32, #tpu.memory_space<vmem>>, %arg2: memref<8x1024xf32, #tpu.memory_space<vmem>>, %arg3: memref<8x1024xf32, #tpu.memory_space<vmem>>) attributes {dimension_semantics = [#tpu.dimension_semantics<parallel>], iteration_bounds = array<i64: 1>, scalar_prefetch = 0 : i64, scratch_operands = 0 : i64, tpu.core_type = #tpu.core_type<tc>, window_params = [{transform_indices = @transform_0, window_bounds = array<i64: 8, 1024>}, {transform_indices = @transform_1, window_bounds = array<i64: 8, 1024>}, {transform_indices = @transform_2, window_bounds = array<i64: 8, 1024>}]} {
    %c0 = arith.constant 0 : index
    %c0_0 = arith.constant 0 : index
    %0 = vector.load %arg1[%c0, %c0_0] : memref<8x1024xf32, #tpu.memory_space<vmem>>, vector<8x1024xf32>
    %c0_1 = arith.constant 0 : index
    %c0_2 = arith.constant 0 : index
    %1 = vector.load %arg2[%c0_1, %c0_2] : memref<8x1024xf32, #tpu.memory_space<vmem>>, vector<8x1024xf32>
    %2 = arith.subf %0, %1 : vector<8x1024xf32>
    %3 = arith.mulf %2, %2 : vector<8x1024xf32>
    %c0_3 = arith.constant 0 : index
    %c0_4 = arith.constant 0 : index
    %4 = vector.load %arg3[%c0_3, %c0_4] : memref<8x1024xf32, #tpu.memory_space<vmem>>, vector<8x1024xf32>
    tpu.vector_store %arg3[%c0_3, %c0_4], %3 {strides = array<i32>} : memref<8x1024xf32, #tpu.memory_space<vmem>>, vector<8x1024xf32>,
    return
  }
  func.func @transform_0(%arg0: i32) -> (i32, i32) {
    %c0_i32 = arith.constant 0 : i32
    %c0_i32_0 = arith.constant 0 : i32
    return %arg0, %c0_i32 : i32, i32
  }
  func.func @transform_1(%arg0: i32) -> (i32, i32) {
    %c0_i32 = arith.constant 0 : i32
    %c0_i32_0 = arith.constant 0 : i32
    return %arg0, %c0_i32 : i32, i32
  }
  func.func @transform_2(%arg0: i32) -> (i32, i32) {
    %c0_i32 = arith.constant 0 : i32
    %c0_i32_0 = arith.constant 0 : i32
    return %arg0, %c0_i32 : i32, i32
  }
}

</mosaic_0001>

<bundles_post_ra>
// kernel: tpu_custom_call.1
= control target key start
LH: loop header
LB: loop body
LE: loop exit
PB: predicated region body
PF: predicated region fallthrough
CT: control target
= control target key end

     0   :  { %7 = vsyncpa [#allocation3], 0  ;;  %s240_s0 = inlined_call_operand.hbm [shape: f32[1,1024], index: 0, kind: input, shape index: {}]   ;;  %s241_s1 = inlined_call_operand.hbm [shape: f32[1,1024], index: 1, kind: input, shape index: {}]   ;;  %s242_s2 = inlined_call_operand.hbm [shape: f32[1,1024], index: 2, kind: output, shape index: {}]  }
   0x1   :  { %8 = vsyncpa [#allocation6], 0 }
   0x2   :  { %9 = vsyncpa [#allocation4], 0 }
   0x3   :  { %14 = vsyncadd [#allocation3], 896  ;;  %s175_s9 = smov [#allocation2]   ;;  %s103_s13 = scalar_lea.hbm %s240_s0, 128 }
   0x4   :  { %s15_s10 = sshll.u32 %s175_s9, 4  ;;  %p104_p0 = scmp.ne.s32.totalorder %s240_s0, %s103_s13  ;;  %s16_s10 = int_to_ptr.vmem [resolvable:$true] %s15_s10 }
   0x5   :  { %p107_p1 = scmp.lt.u32.totalorder %s103_s13, %s240_s0 }
   0x7   :  { %p109_p2 = pnand %p107_p1, %p104_p0 }
   0x9   :  { %112 = shalt.err (!%p109_p2)
}
   0xa   :  { %s113_s18 = scalar_lea.vmem %s16_s10, 128  ;;  %s117_s19 = scalar_lea.vmem %s16_s10, 1024 }
   0xb   :  { %p114_p3 = scmp.ne.s32.totalorder %s16_s10, %s113_s18  ;;  %p118_p4 = scmp.lt.s32.totalorder %s16_s10, %s16_s10 }
   0xc   :  { %p119_p5 = scmp.lt.s32.totalorder %s117_s19, %s113_s18 }
   0xe   :  { %p120_p6 = por %p119_p5, %p118_p4 }
  0x10   :  { %p121_p7 = pnand %p120_p6, %p114_p3 }
  0x12   :  { %124 = shalt.err (!%p121_p7)
}
  0x13   :  { %s176_s20 = smov 128   ;;  %s177_s21 = smov 8  }
  0x14   :  { %21 = dma.hbm_to_vmem [thread:$0]  %s240_s0, 128, %s16_s10, [#allocation3], %s176_s20, %s176_s20, %s177_s21  }
  0x15   :  { %26 = vsyncadd [#allocation6], 896  ;;  %s178_s24 = smov [#allocation5]   ;;  %s125_s28 = scalar_lea.hbm %s241_s1, 128 }
  0x16   :  { %s27_s25 = sshll.u32 %s178_s24, 4  ;;  %p126_p8 = scmp.ne.s32.totalorder %s241_s1, %s125_s28  ;;  %s28_s25 = int_to_ptr.vmem [resolvable:$true] %s27_s25 }
  0x17   :  { %p129_p9 = scmp.lt.u32.totalorder %s125_s28, %s241_s1 }
  0x19   :  { %p131_p10 = pnand %p129_p9, %p126_p8 }
  0x1b   :  { %134 = shalt.err (!%p131_p10)
}
  0x1c   :  { %s135_s5 = scalar_lea.vmem %s28_s25, 128  ;;  %s139_s0 = scalar_lea.vmem %s28_s25, 1024 }
  0x1d   :  { %p136_p11 = scmp.ne.s32.totalorder %s28_s25, %s135_s5  ;;  %p140_p12 = scmp.lt.s32.totalorder %s28_s25, %s28_s25 }
  0x1e   :  { %p141_p13 = scmp.lt.s32.totalorder %s139_s0, %s135_s5 }
  0x20   :  { %p142_p0 = por %p141_p13, %p140_p12 }
  0x22   :  { %p143_p1 = pnand %p142_p0, %p136_p11 }
  0x24   :  { %146 = shalt.err (!%p143_p1)
}
  0x25   :  { %33 = dma.hbm_to_vmem [thread:$0]  %s241_s1, 128, %s28_s25, [#allocation6], %s176_s20, %s176_s20, %s177_s21  }
  0x26   :  { %169 = dma.done.wait [#allocation3], 1024  }
  0x27   :  { %170 = vsyncadd [#allocation3], 4294966272 }
  0x28   :  { %171 = dma.done.wait [#allocation6], 1024  }
  0x29   :  { %172 = vsyncadd [#allocation6], 4294966272  ;;  %v40_v0 = vld [vmem:[#allocation2] sm:$0xff]  ;;  %v41_v2 = vld [vmem:[#allocation2 + $0x8] sm:$0xff] }
  0x2a   :  { %v48_v1 = vld [vmem:[#allocation5] sm:$0xff]  ;;  %v49_v4 = vld [vmem:[#allocation5 + $0x8] sm:$0xff]  ;;  %v42_v5 = vld [vmem:[#allocation2 + $0x10] sm:$0xff] }
  0x2b   :  { %v56_v3 = vsub.f32 %v40_v0, %v48_v1  ;;  %v50_v6 = vld [vmem:[#allocation5 + $0x10] sm:$0xff]  ;;  %v57_v7 = vsub.f32 %v41_v2, %v49_v4  ;;  %v43_v9 = vld [vmem:[#allocation2 + $0x18] sm:$0xff]  ;;  %v44_v11 = vld [vmem:[#allocation2 + $0x20] sm:$0xff] }
  0x2c   :  { %v58_v8 = vsub.f32 %v42_v5, %v50_v6  ;;  %v51_v10 = vld [vmem:[#allocation5 + $0x18] sm:$0xff]  ;;  %v52_v14 = vld [vmem:[#allocation5 + $0x20] sm:$0xff]  ;;  %v45_v15 = vld [vmem:[#allocation2 + $0x28] sm:$0xff] }
  0x2d   :  { %v64_v12 = vmul.f32 %v56_v3, %v56_v3  ;;  %v59_v13 = vsub.f32 %v43_v9, %v51_v10  ;;  %v53_v16 = vld [vmem:[#allocation5 + $0x28] sm:$0xff]  ;;  %v65_v17 = vmul.f32 %v57_v7, %v57_v7  ;;  %v60_v19 = vsub.f32 %v44_v11, %v52_v14  ;;  %v46_v21 = vld [vmem:[#allocation2 + $0x30] sm:$0xff]  ;;  %v47_v23 = vld [vmem:[#allocation2 + $0x38] sm:$0xff] }
  0x2e   :  { %v66_v18 = vmul.f32 %v58_v8, %v58_v8  ;;  %v61_v20 = vsub.f32 %v45_v15, %v53_v16  ;;  %v54_v22 = vld [vmem:[#allocation5 + $0x30] sm:$0xff]  ;;  %v55_v26 = vld [vmem:[#allocation5 + $0x38] sm:$0xff] }
  0x2f   :  { %72 = vst [vmem:[#allocation7] sm:$0xff] %v64_v12  ;;  %v67_v24 = vmul.f32 %v59_v13, %v59_v13  ;;  %v62_v25 = vsub.f32 %v46_v21, %v54_v22  ;;  %73 = vst [vmem:[#allocation7 + $0x8] sm:$0xff] %v65_v17  ;;  %v68_v27 = vmul.f32 %v60_v19, %v60_v19 }
  0x30   :  { %74 = vst [vmem:[#allocation7 + $0x10] sm:$0xff] %v66_v18  ;;  %v69_v28 = vmul.f32 %v61_v20, %v61_v20  ;;  %v63_v29 = vsub.f32 %v47_v23, %v55_v26 }
  0x31   :  { %75 = vst [vmem:[#allocation7 + $0x18] sm:$0xff] %v67_v24  ;;  %v70_v30 = vmul.f32 %v62_v25, %v62_v25  ;;  %76 = vst [vmem:[#allocation7 + $0x20] sm:$0xff] %v68_v27 }
  0x32   :  { %77 = vst [vmem:[#allocation7 + $0x28] sm:$0xff] %v69_v28  ;;  %v71_v31 = vmul.f32 %v63_v29, %v63_v29 }
  0x33   :  { %78 = vst [vmem:[#allocation7 + $0x30] sm:$0xff] %v70_v30 }
  0x34   :  { %79 = vst [vmem:[#allocation7 + $0x38] sm:$0xff] %v71_v31 }
  0x35   :  { %84 = vsyncadd [#allocation4], 896  ;;  %s179_s1 = smov [#allocation7]  }
  0x36   :  { %s85_s8 = sshll.u32 %s179_s1, 4  ;;  %s86_s8 = int_to_ptr.vmem [resolvable:$true] %s85_s8 }
  0x37   :  { %s147_s9 = scalar_lea.vmem %s86_s8, 128  ;;  %s151_s10 = scalar_lea.vmem %s86_s8, 1024 }
  0x38   :  { %p148_p2 = scmp.ne.s32.totalorder %s86_s8, %s147_s9  ;;  %p152_p3 = scmp.lt.s32.totalorder %s86_s8, %s86_s8 }
  0x39   :  { %p153_p4 = scmp.lt.s32.totalorder %s151_s10, %s147_s9 }
  0x3b   :  { %p154_p5 = por %p153_p4, %p152_p3 }
  0x3d   :  { %p155_p6 = pnand %p154_p5, %p148_p2 }
  0x3f   :  { %158 = shalt.err (!%p155_p6)
}
  0x40   :  { %s159_s13 = scalar_lea.hbm %s242_s2, 128 }
  0x41   :  { %p160_p7 = scmp.ne.s32.totalorder %s242_s2, %s159_s13  ;;  %p163_p8 = scmp.lt.u32.totalorder %s159_s13, %s242_s2 }
  0x43   :  { %p165_p9 = pnand %p163_p8, %p160_p7 }
  0x45   :  { %168 = shalt.err (!%p165_p9)
}
  0x46   :  { %91 = dma.vmem_to_hbm [thread:$0]  %s86_s8, 128, %s242_s2, [#allocation4], %s176_s20, %s176_s20, %s177_s21  }
  0x47   :  { %173 = dma.done.wait [#allocation4], 1024  }
  0x48   :  { %174 = vsyncadd [#allocation4], 4294966272 }
  0x49   :  { %95 = vsyncpa [#allocation3], 1 }
  0x4a   :  { %96 = vsyncpa [#allocation6], 1 }
  0x4b   :  { %97 = vsyncpa [#allocation4], 1 }

</bundles_post_ra>
